<compile_context>
chip_gen: v6e
topology: v6e:2x2x1
jax: 0.10.0
libtpu: 0.0.40
codegen_flags: <defaults>
</compile_context>

<pallas_src>
import math

import jax
import jax.numpy as jnp
from jax.experimental import pallas as pl
from jax.experimental.pallas import tpu as pltpu


def _round_up(x, m):
    return ((x + m - 1) // m) * m


def _vmem_capacity_bytes():
    """Physical VMEM per core (v5e/v6e: 128 MiB, v7x: 64 MiB).  Conservative
    64 MiB fallback if the query is unavailable."""
    try:
        return int(pltpu.get_tpu_info().vmem_capacity_bytes)
    except Exception:
        return 64 << 20


def _k_plan(f_in, itemsize, vmem_cap):
    """(padded F_in, K tile).

    Full-K resident whenever the weight slab stays modest for the generation's
    VMEM (4096 f32 / 8192 bf16 on 128 MiB parts, half on 64 MiB parts);
    otherwise K is streamed in wide slabs.  F_in is always padded to a
    lane-dense multiple of 128 (MXU contraction dim)."""
    full_k = ((4096 if vmem_cap >= (96 << 20) else 2048) * 4) // max(itemsize, 1)
    f_in_128 = _round_up(max(f_in, 1), 128)
    if f_in_128 <= full_k:
        return f_in_128, f_in_128
    tk = 1024 if itemsize >= 4 else 2048
    return _round_up(f_in, tk), tk


def _linear_kernel(x_ref, wt_ref, b_ref, o_ref, acc_ref):
    k = pl.program_id(2)          # K is the innermost (reduction) axis

    @pl.when(k == 0)
    def _():
        acc_ref[...] = jnp.zeros_like(acc_ref)

    # Cast the x tile to the weight dtype (no-op when equal) so the MXU gets
    # matched narrow operands; accumulation stays f32.
    acc_ref[...] += jnp.dot(
        x_ref[...].astype(wt_ref.dtype), wt_ref[...],
        preferred_element_type=jnp.float32,
    )

    @pl.when(k == pl.num_programs(2) - 1)
    def _():
        # Bias stays f32: add to the f32 accumulator, single cast on the way
        # out.  Partial last tiles (rows beyond M, cols beyond F_out) rely on
        # Pallas masking the store -- fine for a row/col-independent matmul.
        o_ref[...] = (acc_ref[...] + b_ref[...]).astype(o_ref.dtype)


def prepare_linear_params(weight, bias=None, *, param_dtype=jnp.bfloat16):
    """One-time layout prep (do NOT call per forward):
      - transpose torch-layout (F_out, F_in) weight to (F_in, F_out),
      - cast to param_dtype (default bf16 -> full-rate MXU, half HBM traffic;
        pass jnp.float32 / None for full precision),
      - pad F_out to a multiple of 128 (lane-dense weight/bias/output tiles),
      - pad F_in to a multiple of 128 (or the K streaming tile),
      - keep the bias in float32 (added to the f32 accumulator in-kernel).
    Returns (wt_padded, bias_f32_padded, f_out)."""
    f_out, f_in = weight.shape
    f_out_p = _round_up(f_out, 128)
    dt = weight.dtype if param_dtype is None else jnp.dtype(param_dtype)
    f_in_p, _ = _k_plan(f_in, jnp.dtype(dt).itemsize, _vmem_capacity_bytes())

    wt = weight.T.astype(dt)                         # (F_in, F_out), once
    if (f_in_p, f_out_p) != (f_in, f_out):
        wt = jnp.pad(wt, ((0, f_in_p - f_in), (0, f_out_p - f_out)))

    if bias is None:
        b2 = jnp.zeros((1, f_out_p), dtype=jnp.float32)
    else:
        b2 = bias.astype(jnp.float32).reshape(1, f_out)
        if f_out_p != f_out:
            b2 = jnp.pad(b2, ((0, 0), (0, f_out_p - f_out)))
    return wt, b2, f_out


def linear_forward(x, wt, b2, f_out, *, tm_max=512):
    """Equivalent of F.linear(x, weight, bias) for arbitrary leading dims,
    using params prepared by prepare_linear_params.  Output dtype == x.dtype."""
    orig_shape = x.shape
    f_in = orig_shape[-1]
    f_in_p, f_out_p = wt.shape
    out_dtype = x.dtype

    vmem_cap = _vmem_capacity_bytes()
    w_itemsize = jnp.dtype(wt.dtype).itemsize
    _, tk = _k_plan(f_in_p, w_itemsize, vmem_cap)    # idempotent on padded F_in
    k_grid = f_in_p // tk

    # N tile: largest of {512, 384, 256, 128} that EXACTLY divides padded F_out
    # (every weight/bias block full and lane-dense; fixes the old //-drop bug).
    tn = 128
    for cand in (512, 384, 256, 128):
        if f_out_p % cand == 0:
            tn = cand
            break
    n_grid = f_out_p // tn

    xm = x.reshape(-1, f_in)
    m = xm.shape[0]

    # Pre-cast x to the (narrower) weight dtype only when it will be
    # re-streamed across N tiles; otherwise cast per-tile inside the kernel
    # and avoid an extra full-x HBM read+write pass.
    if n_grid > 1 and w_itemsize < jnp.dtype(xm.dtype).itemsize:
        xm = xm.astype(wt.dtype)
    if f_in_p != f_in:
        xm = jnp.pad(xm, ((0, 0), (0, f_in_p - f_in)))   # zero K-pad: inert

    x_itemsize = jnp.dtype(xm.dtype).itemsize
    o_itemsize = jnp.dtype(out_dtype).itemsize
    row_align = 8 if (x_itemsize >= 4 and o_itemsize >= 4) else 16  # bf16 packs 16 rows

    tm = min(tm_max, _round_up(max(m, 1), row_align))
    m_grid = pl.cdiv(m, tm)
    # Guarantee >= 2 parallel tiles so both v7x TensorCores get work.
    if m_grid * n_grid == 1 and m >= 2 * row_align:
        tm = _round_up(pl.cdiv(m, 2), row_align)
        m_grid = pl.cdiv(m, tm)

    # Pick the grid order that minimizes HBM re-streaming:
    #   N outermost  -> weight fetched once, x re-read n_grid times
    #   M outermost  -> x fetched once, weight re-read m_grid times
    w_bytes_total = f_in_p * f_out_p * w_itemsize
    x_bytes_total = m * f_in_p * x_itemsize
    n_outer = w_bytes_total * (m_grid - 1) >= x_bytes_total * (n_grid - 1)

    if n_outer:
        grid = (n_grid, m_grid, k_grid)
        x_map = lambda j, i, k: (i, k)
        w_map = lambda j, i, k: (k, j)
        b_map = lambda j, i, k: (0, j)
        o_map = lambda j, i, k: (i, j)
    else:
        grid = (m_grid, n_grid, k_grid)
        x_map = lambda i, j, k: (i, k)
        w_map = lambda i, j, k: (k, j)
        b_map = lambda i, j, k: (0, j)
        o_map = lambda i, j, k: (i, j)

    # VMEM budget: double-buffered x / weight / bias / out tiles (out sized
    # with the OUTPUT dtype) + f32 accumulator scratch.  Cap at ~5/8 of the
    # generation's physical VMEM (v7x 64 MiB -> 40 MiB, v5e/v6e 128 -> 80 MiB).
    est = (2 * tm * tk * x_itemsize
           + 2 * tk * tn * w_itemsize
           + 2 * tm * tn * o_itemsize
           + tm * tn * 4
           + 2 * tn * 4)
    cap = min(vmem_cap * 5 // 8, 96 << 20)
    vmem_limit = int(min(max(2 * est, 32 << 20), cap))

    out = pl.pallas_call(
        _linear_kernel,
        # True output shape: no padded output + post-slice round trip; only
        # the last partial N tile (if any) uses a masked store.
        out_shape=jax.ShapeDtypeStruct((m, f_out), out_dtype),
        grid_spec=pltpu.PrefetchScalarGridSpec(
            num_scalar_prefetch=0,
            grid=grid,
            in_specs=[
                pl.BlockSpec((tm, tk), x_map),    # x row tile
                pl.BlockSpec((tk, tn), w_map),    # weight slab (padded, dense)
                pl.BlockSpec((1, tn), b_map),     # f32 bias
            ],
            out_specs=pl.BlockSpec((tm, tn), o_map),
            scratch_shapes=[pltpu.VMEM((tm, tn), jnp.float32)],
        ),
        compiler_params=pltpu.CompilerParams(
            dimension_semantics=("parallel", "parallel", "arbitrary"),
            vmem_limit_bytes=vmem_limit,
        ),
    )(xm, wt, b2)

    return out.reshape(*orig_shape[:-1], f_out)


def init_linear_params(key, in_channels, out_channels, bias=True,
                       dtype=jnp.float32):
    """Deterministic init matching the module's default (kaiming_uniform with
    a=sqrt(5) on fan=in_channels -> U(-1/sqrt(fan), 1/sqrt(fan)); bias likewise)."""
    kw, kb = jax.random.split(key)
    bound = 1.0 / math.sqrt(in_channels)
    weight = jax.random.uniform(
        kw, (out_channels, in_channels), dtype, minval=-bound, maxval=bound)
    b = None
    if bias:
        b = jax.random.uniform(
            kb, (out_channels,), dtype, minval=-bound, maxval=bound)
    return weight, b


if __name__ == "__main__":
    key = jax.random.PRNGKey(0)
    k_x1, k_p1, k_x2, k_p2, k_x3, k_p3 = jax.random.split(key, 6)

    # Case 1: (*, F_in) -> (*, F_out) with default bf16 MXU operands / f32 acc.
    batch, seq, f_in1, f_out1 = 2, 8, 32, 64
    x1 = jax.random.normal(k_x1, (batch, seq, f_in1), jnp.float32)
    w1, b1 = init_linear_params(k_p1, f_in1, f_out1, bias=True)
    wt1, bb1, fo1 = prepare_linear_params(w1, b1)            # bf16 by default
    y1 = jax.block_until_ready(linear_forward(x1, wt1, bb1, fo1))
    y1_ref = x1 @ w1.T + b1
    assert y1.shape == (batch, seq, f_out1), y1.shape
    assert jnp.allclose(y1, y1_ref, atol=5e-2, rtol=5e-2), \
        float(jnp.max(jnp.abs(y1 - y1_ref)))

    # Case 2: full-precision path, non-128-aligned channels, partial row tiles.
    m2, fi2, fo2 = 300, 96, 200
    x2 = jax.random.normal(k_x2, (m2, fi2), jnp.float32)
    w2, b2r = init_linear_params(k_p2, fi2, fo2, bias=True)
    wt2, bb2, fo2_ = prepare_linear_params(w2, b2r, param_dtype=jnp.float32)
    y2 = jax.block_until_ready(linear_forward(x2, wt2, bb2, fo2_))
    y2_ref = x2 @ w2.T + b2r
    assert y2.shape == (m2, fo2), y2.shape
    assert jnp.allclose(y2, y2_ref, atol=1e-4, rtol=1e-4), \
        float(jnp.max(jnp.abs(y2 - y2_ref)))

    # Case 3: padded F_out (640) that is NOT a multiple of 512 -> multiple N
    # tiles + partial last output tile (regression test for the old grid
    # floor-division bug), no bias, f32 params.
    m3, fi3, fo3 = 64, 256, 600
    x3 = jax.random.normal(k_x3, (m3, fi3), jnp.float32)
    w3, _ = init_linear_params(k_p3, fi3, fo3, bias=False)
    wt3, bb3, fo3_ = prepare_linear_params(w3, None, param_dtype=jnp.float32)
    y3 = jax.block_until_ready(linear_forward(x3, wt3, bb3, fo3_))
    y3_ref = x3 @ w3.T
    assert y3.shape == (m3, fo3), y3.shape
    assert jnp.allclose(y3, y3_ref, atol=1e-4, rtol=1e-4), \
        float(jnp.max(jnp.abs(y3 - y3_ref)))

    print("KERNEL_OK")
</pallas_src>

<mosaic_0001>
module attributes {stable_mosaic.version = 11 : i64} {
  func.func @_linear_kernel(%arg0: i32, %arg1: i32, %arg2: i32, %arg3: memref<8x128xf32, #tpu.memory_space<vmem>>, %arg4: memref<128x128xbf16, #tpu.memory_space<vmem>>, %arg5: memref<1x128xf32, #tpu.memory_space<vmem>>, %arg6: memref<8x128xf32, #tpu.memory_space<vmem>>, %arg7: memref<8x128xf32, #tpu.memory_space<vmem>>) attributes {dimension_semantics = [#tpu.dimension_semantics<parallel>, #tpu.dimension_semantics<parallel>, #tpu.dimension_semantics<arbitrary>], iteration_bounds = array<i64: 1, 2, 1>, scalar_prefetch = 0 : i64, scratch_operands = 1 : i64, tpu.core_type = #tpu.core_type<tc>, window_params = [{transform_indices = @transform_0, window_bounds = array<i64: 8, 128>}, {transform_indices = @transform_1, window_bounds = array<i64: 128, 128>}, {transform_indices = @transform_2, window_bounds = array<i64: 1, 128>}, {transform_indices = @transform_3, window_bounds = array<i64: 8, 128>}]} {
    %c0_i32 = arith.constant 0 : i32
    %0 = arith.cmpi eq, %arg2, %c0_i32 : i32
    %1 = arith.extui %0 : i1 to i32
    %c0_i32_0 = arith.constant 0 : i32
    %2 = arith.cmpi ne, %1, %c0_i32_0 : i32
    scf.if %2 {
      %cst_10 = arith.constant 0.000000e+00 : f32
      %13 = vector.broadcast %cst_10 : f32 to vector<8x128xf32>
      %c0_11 = arith.constant 0 : index
      %c0_12 = arith.constant 0 : index
      %14 = vector.load %arg7[%c0_11, %c0_12] : memref<8x128xf32, #tpu.memory_space<vmem>>, vector<8x128xf32>
      tpu.vector_store %arg7[%c0_11, %c0_12], %13 {strides = array<i32>} : memref<8x128xf32, #tpu.memory_space<vmem>>, vector<8x128xf32>,
    } else {
    }
    %c0 = arith.constant 0 : index
    %c0_1 = arith.constant 0 : index
    %3 = vector.load %arg7[%c0, %c0_1] : memref<8x128xf32, #tpu.memory_space<vmem>>, vector<8x128xf32>
    %c0_2 = arith.constant 0 : index
    %c0_3 = arith.constant 0 : index
    %4 = vector.load %arg3[%c0_2, %c0_3] : memref<8x128xf32, #tpu.memory_space<vmem>>, vector<8x128xf32>
    %5 = arith.truncf %4 : vector<8x128xf32> to vector<8x128xbf16>
    %c0_4 = arith.constant 0 : index
    %c0_5 = arith.constant 0 : index
    %6 = vector.load %arg4[%c0_4, %c0_5] : memref<128x128xbf16, #tpu.memory_space<vmem>>, vector<128x128xbf16>
    %cst = arith.constant dense<0.000000e+00> : vector<8x128xf32>
    %7 = tpu.matmul %5, %6, %cst {dimension_numbers = #tpu.dot_dimension_numbers<[1], [0], [0], [1], [0, 0, 1, 1], [], []>} : vector<8x128xbf16>, vector<128x128xbf16>, vector<8x128xf32> -> vector<8x128xf32>
    %8 = arith.addf %3, %7 : vector<8x128xf32>
    %c0_6 = arith.constant 0 : index
    %c0_7 = arith.constant 0 : index
    %9 = vector.load %arg7[%c0_6, %c0_7] : memref<8x128xf32, #tpu.memory_space<vmem>>, vector<8x128xf32>
    tpu.vector_store %arg7[%c0_6, %c0_7], %8 {strides = array<i32>} : memref<8x128xf32, #tpu.memory_space<vmem>>, vector<8x128xf32>,
    %c0_i32_8 = arith.constant 0 : i32
    %10 = arith.cmpi eq, %arg2, %c0_i32_8 : i32
    %11 = arith.extui %10 : i1 to i32
    %c0_i32_9 = arith.constant 0 : i32
    %12 = arith.cmpi ne, %11, %c0_i32_9 : i32
    scf.if %12 {
      %c0_10 = arith.constant 0 : index
      %c0_11 = arith.constant 0 : index
      %13 = vector.load %arg7[%c0_10, %c0_11] : memref<8x128xf32, #tpu.memory_space<vmem>>, vector<8x128xf32>
      %c0_12 = arith.constant 0 : index
      %c0_13 = arith.constant 0 : index
      %14 = vector.load %arg5[%c0_12, %c0_13] : memref<1x128xf32, #tpu.memory_space<vmem>>, vector<1x128xf32>
      %15 = vector.broadcast %14 : vector<1x128xf32> to vector<8x128xf32>
      %16 = arith.addf %13, %15 : vector<8x128xf32>
      %c0_14 = arith.constant 0 : index
      %c0_15 = arith.constant 0 : index
      %17 = vector.load %arg6[%c0_14, %c0_15] : memref<8x128xf32, #tpu.memory_space<vmem>>, vector<8x128xf32>
      tpu.vector_store %arg6[%c0_14, %c0_15], %16 {strides = array<i32>} : memref<8x128xf32, #tpu.memory_space<vmem>>, vector<8x128xf32>,
    } else {
    }
    return
  }
  func.func @transform_0(%arg0: i32, %arg1: i32, %arg2: i32) -> (i32, i32) {
    %c0_i32 = arith.constant 0 : i32
    return %arg1, %arg2 : i32, i32
  }
  func.func @transform_1(%arg0: i32, %arg1: i32, %arg2: i32) -> (i32, i32) {
    %c0_i32 = arith.constant 0 : i32
    return %arg2, %arg0 : i32, i32
  }
  func.func @transform_2(%arg0: i32, %arg1: i32, %arg2: i32) -> (i32, i32) {
    %c0_i32 = arith.constant 0 : i32
    %c0_i32_0 = arith.constant 0 : i32
    return %c0_i32, %arg0 : i32, i32
  }
  func.func @transform_3(%arg0: i32, %arg1: i32, %arg2: i32) -> (i32, i32) {
    %c0_i32 = arith.constant 0 : i32
    return %arg1, %arg0 : i32, i32
  }
}

</mosaic_0001>

<bundles_post_ra>
// kernel: tpu_custom_call.1
= control target key start
LH: loop header
LB: loop body
LE: loop exit
PB: predicated region body
PF: predicated region fallthrough
CT: control target
= control target key end

     0   :  { %8 = vsyncpa [#allocation4], 0  ;;  %s995_s0 = inlined_call_operand.hbm [shape: f32[16,128], index: 0, kind: input, shape index: {}]   ;;  %s996_s1 = inlined_call_operand.hbm [shape: bf16[128,128], index: 1, kind: input, shape index: {}]   ;;  %s997_s2 = inlined_call_operand.vmem [shape: f32[1,128], index: 2, kind: input, shape index: {}]   ;;  %s998_s3 = inlined_call_operand.hbm [shape: f32[16,64], index: 3, kind: output, shape index: {}]  }
   0x1   :  { %10 = vsyncpa [#allocation4 + $0x1], 0 }
   0x2   :  { %11 = vsyncpa [#allocation7], 0 }
   0x3   :  { %12 = vsyncpa [#allocation5], 0 }
   0x4   :  { %14 = vsyncpa [#allocation5 + $0x1], 0  ;;  %s809_s12 = smov 0   ;;  %s811_s13 = smov 0  }
   0x5   :  { %s813_s14 = smov 0   ;;  %s815_s15 = smov 0  }
   0x6   :  { %s817_s16 = smov 0   ;;  %s819_s17 = smov 0  }
   0x7 LB: > { %s503_s18 = sadd.s32 4294967295, %s780_s17   ;;  %s504_s19 = sadd.s32 4294967294, %s780_s17   ;;  %s780_s17 = sphi %s819_s17, %s20_s17   ;;  %s776_s16 = sphi %s817_s16, %s1016_s16   ;;  %s772_s15 = sphi %s815_s15, %s1015_s15   ;;  %s768_s14 = sphi %s813_s14, %s1014_s14   ;;  %s764_s13 = sphi %s811_s13, %s1013_s13   ;;  %s760_s12 = sphi %s809_s12, %s1012_s12  }
   0x8   : > { %p61_p0 = scmp.ne.s32.totalorder %s764_s13, %s760_s12  ;;  %p843_p1 = scmp.eq.s32.totalorder %s503_s18, 0 }
   0x9   : > { %p847_p2 = scmp.eq.s32.totalorder %s503_s18, 1  ;;  %p147_p3 = scmp.eq.s32.totalorder %s504_s19, 1 }
   0xa   : > { %p853_p4 = por %p843_p1, %p61_p0  ;;  %p505_p5 = scmp.ge.s32.totalorder %s780_s17, 1 }
   0xb   : > { %p858_p6 = por %p147_p3, %p61_p0  ;;  %p154_p7 = scmp.lt.s32.totalorder %s780_s17, 3 }
   0xc   : > { %s1002_s22 = scalar_select %p853_p4, 1, 0 }
   0xd   : > { %s1003_s23 = scalar_select %p858_p6, 1, 0 }
   0xe   : > { %p863_p8 = pnand %p505_p5, %p154_p7  ;;  %s782_s25 = smov [#allocation6]  }
   0xf   : > { %s170_s26 = sshll.u32 %s782_s25, 4  ;;  %s35_s28 = sadd.s32 1, %s776_s16  ;;  %s171_s26 = int_to_ptr.vmem [resolvable:$true] %s170_s26 }
  0x10   : > { %p565_p9 = pneg %p863_p8  ;;  %s653_s29 = scalar_lea.vmem %s171_s26, 1024 }
  0x11   : > { %p654_p13 = scmp.ne.s32.totalorder %s171_s26, %s653_s29  ;;  %p661_p5 = scmp.lt.s32.totalorder %s171_s26, %s171_s26 }
  0x12   : > { %p872_p11 = pnand %p565_p9, %p843_p1  ;;  %p662_p7 = scmp.lt.s32.totalorder %s653_s29, %s653_s29 }
  0x14   : > { %p644_p12 = pneg %p872_p11  ;;  %p663_p6 = por %p662_p7, %p661_p5 }
  0x16   : > { %p656_p0 = pnand %p654_p13, %p644_p12 }
  0x18   : > { %p657_p3 = pneg %p656_p0 }
  0x1a   : > { %p664_p4 = pnand %p663_p6, %p657_p3 }
  0x1c   : > { %667 = shalt.err (!%p664_p4)
}
  0x1d   : > { %s783_s30 = smov 64   ;;  %s784_s4 = smov 4  }
  0x1e   : > { %568 = dma.hbm_to_vmem [thread:$0]  (!%p872_p11), %s996_s1, 1024, %s171_s26, [#allocation7], %s783_s30, %s783_s30, %s784_s4  }
  0x1f   : > { %p37_p6 = scmp.ge.s32.totalorder %s35_s28, 2  ;;  %s48_s7 = sadd.s32 1, %s768_s14 }
  0x20   : > { %p55_p4 = scmp.ne.s32.totalorder %s768_s14, %s764_s13  ;;  %p56_p9 = scmp.eq.s32.totalorder %s780_s17, 0 }
  0x21   : > { %s1018_s28 = smov (%p37_p6, %s35_s28), 0  ;;  %p578_p0 = scmp.lt.s32.totalorder %s780_s17, 2 }
  0x22   : > { %p890_p12 = por %p56_p9, %p55_p4  ;;  %p896_p13 = por %p847_p2, %p55_p4 }
  0x23   : > { %s43_s10 = ssub.s32 %s776_s16, %s1018_s28  ;;  %s190_s11 = sand.u32 1, %s768_s14  }
  0x24   : > { %p46_p11 = scmp.eq.s32.totalorder %s43_s10, 0  ;;  %s509_s18 = sshll.u32 %s190_s11, 3 }
  0x25   : > { %s510_s25 = sshll.u32 %s776_s16, 7  ;;  %s194_s30 = scalar_lea.vmem [#allocation3], %s509_s18 }
  0x26   : > { %s905_s19 = scalar_select %p46_p11, %s768_s14, %s48_s7  }
  0x27   : > { %s200_s29 = scalar_lea.hbm %s995_s0, %s510_s25  ;;  %s202_s4 = sshll.u32 %s194_s30, 4  ;;  %s203_s4 = int_to_ptr.vmem [resolvable:$true] %s202_s4 }
  0x28   : > { %p913_p2 = pnand %p578_p0, %p890_p12  ;;  %s191_s5 = scalar_lea.sflag [#allocation4], %s190_s11 }
  0x29   : > { %s681_s6 = scalar_lea.vmem %s203_s4, 128  ;;  %s785_s7 = smov [#allocation3]  }
  0x2a   : > { %p670_p3 = pneg %p913_p2  ;;  %p682_p5 = scmp.ne.s32.totalorder %s203_s4, %s681_s6 }
  0x2b   : > { %s686_s10 = sshll.u32 %s785_s7, 4  ;;  %s687_s10 = int_to_ptr.vmem [resolvable:$false] %s686_s10 }
  0x2c   : > { %p684_p7 = pnand %p682_p5, %p670_p3  ;;  %s688_s25 = scalar_lea.vmem %s687_s10, 256 }
  0x2d   : > { %p689_p4 = scmp.lt.s32.totalorder %s203_s4, %s687_s10  ;;  %p690_p9 = scmp.lt.s32.totalorder %s688_s25, %s681_s6 }
  0x2e   : > { %p685_p6 = pneg %p684_p7 }
  0x2f   : > { %p691_p11 = por %p690_p9, %p689_p4 }
  0x31   : > { %p692_p10 = pnand %p691_p11, %p685_p6 }
  0x33   : > { %695 = shalt.err (!%p692_p10)
}
  0x34   : > { %572 = dma.hbm_to_vmem [thread:$0]  (!%p913_p2), %s200_s29, 128, %s203_s4, %s191_s5  }
  0x35   : > { %211 = sbr.rel (%p863_p8) target bundleno = 303 (0x12f), region = 32  ;;  %s924_s8 = sand.u32 (!%p863_p8), 1, %s764_s13  }
  0x36   : > { %s512_s11 = sshll.u32 (!%p863_p8), %s924_s8, 3  ;;  %s214_s18 = scalar_lea.sflag (!%p863_p8), [#allocation4], %s924_s8 }
  0x37   : > { %s217_s26 = scalar_lea.vmem (!%p863_p8), [#allocation3], %s512_s11  ;;  %p1009_p12 = scmp.ne.s32.totalorder (!%p863_p8), %s1002_s22, 0 }
  0x3a   : > { %747 = dma.done.wait (%p1009_p12), %s214_s18, 128  }
  0x3b   : > { %749 = vsyncadd (%p1009_p12), %s214_s18, 4294967168 }
  0x3c   : > { %751 = dma.done.wait (%p843_p1), [#allocation7], 1024  }
  0x3d   : > { %753 = vsyncadd (%p843_p1), [#allocation7], 4294966272  ;;  %v786_v0 = vmov 0.0   ;;  %vm787_vm0 = vmmov 0   ;;  %v634_v1 = vld [vmem:[#allocation6 + $0x38] sm:$0xff]   ;;  %v635_v2 = vld [vmem:[#allocation6 + $0x30] sm:$0xff]  }
  0x3e   : > { %537 = vmatprep.subr.bf16.mxu0 %v786_v0  ;;  %553 = vmatprep.mubr.msk.bf16.mxu0 %vm787_vm0, %v786_v0  ;;  %v636_v3 = vld [vmem:[#allocation6 + $0x28] sm:$0xff]   ;;  %v637_v4 = vld [vmem:[#allocation6 + $0x20] sm:$0xff]   ;;  %v638_v5 = vld [vmem:[#allocation6 + $0x18] sm:$0xff]   ;;  %s525_s24 = sshll.u32 %s772_s15, 7  ;;  %s246_s27 = scalar_lea.vmem [#allocation8], %s512_s11 }
  0x3f   : > { %538 = vmatpush3.bf16.msra.mxu0 %v634_v1  ;;  %v639_v6 = vld [vmem:[#allocation6 + $0x10] sm:$0xff]   ;;  %v640_v7 = vld [vmem:[#allocation6 + $0x8] sm:$0xff]   ;;  %v641_v8 = vld [vmem:[#allocation6] sm:$0xff]   ;;  %s394_s29 = sshll.u32 %s246_s27, 4  ;;  %s947_s21 = scalar_lea.hbm %s998_s3, %s525_s24  ;;  %s949_s29 = int_to_ptr.vmem [resolvable:$true] %s394_s29 }
  0x40   : > { %539 = vmatprep.subr.bf16.mxu0 %v786_v0  ;;  %v258_v9 = vld [vmem:[%s217_s26] sm:$0xff]  ;;  %s380_s5 = scalar_lea.sflag [#allocation5], %s924_s8  ;;  %s696_s15 = scalar_lea.vmem %s949_s29, 128 }
  0x41   : > { %v259_v10 = vpack.c.bf16 %v258_v9, %v258_v9  ;;  %v523_v11 = vld [vmem:[%s997_s2] ss:$0 sm:$0xff]  ;;  %p697_p1 = scmp.ne.s32.totalorder %s949_s29, %s696_s15  ;;  %s788_s6 = smov [#allocation8]  }
  0x42   : > { %s700_s7 = sshll.u32 %s788_s6, 4  ;;  %s701_s7 = int_to_ptr.vmem [resolvable:$false] %s700_s7 }
  0x43   : > { %540 = vmatpush3.bf16.msra.mxu0 %v635_v2  ;;  %p698_p8 = pnand %p697_p1, %p896_p13  ;;  %s702_s10 = scalar_lea.vmem %s701_s7, 256 }
  0x44   : > { %541 = vmatprep.subr.bf16.mxu0 %v786_v0  ;;  %p703_p0 = scmp.lt.s32.totalorder %s949_s29, %s701_s7  ;;  %p704_p2 = scmp.lt.s32.totalorder %s702_s10, %s696_s15 }
  0x45   : > { %p699_p10 = pneg %p698_p8 }
  0x46   : > { %p705_p3 = por %p704_p2, %p703_p0 }
  0x47   : > { %542 = vmatpush3.bf16.msra.mxu0 %v636_v3 }
  0x48   : > { %543 = vmatprep.subr.bf16.mxu0 %v786_v0  ;;  %p706_p5 = pnand %p705_p3, %p699_p10 }
  0x4b   : > { %544 = vmatpush3.bf16.msra.mxu0 %v637_v4 }
  0x4c   : > { %545 = vmatprep.subr.bf16.mxu0 %v786_v0 }
  0x4f   : > { %546 = vmatpush3.bf16.msra.mxu0 %v638_v5 }
  0x50   : > { %547 = vmatprep.subr.bf16.mxu0 %v786_v0 }
  0x53   : > { %548 = vmatpush3.bf16.msra.mxu0 %v639_v6 }
  0x54   : > { %549 = vmatprep.subr.bf16.mxu0 %v786_v0 }
  0x57   : > { %550 = vmatpush3.bf16.msra.mxu0 %v640_v7 }
  0x58   : > { %551 = vmatprep.subr.bf16.mxu0 %v786_v0 }
  0x5b   : > { %552 = vmatpush3.bf16.msra.mxu0 %v641_v8 }
  0x5e   : > { %554 = vmatmul.mubr.bf16.vlgmr.msra.gmra.mxu0 %v259_v10 }
 0x11e   : > { %v358_v12 = vpop.f32.mrf.mxu0 }
 0x11f   : > { %v377_v13 = vadd.f32 %v523_v11, %v358_v12 }
 0x120   : > { %v555_v14 = vpop.f32.mrf.mxu0 }
 0x121   : > { %378 = vst [vmem:[%s246_s27] sm:$0xff] %v377_v13 }
 0x122   : > { %v361_v15 = vpop.f32.mrf.mxu0 }
 0x123   : > { %709 = shalt.err (!%p706_p5)
}
 0x124   : > { %s710_s25 = scalar_lea.hbm %s947_s21, 128  ;;  %s714_s18 = scalar_lea.hbm %s998_s3, 256 }
 0x125   : > { %p711_p7 = scmp.ne.s32.totalorder %s947_s21, %s710_s25  ;;  %p715_p9 = scmp.lt.s32.totalorder %s947_s21, %s998_s3 }
 0x126   : > { %p716_p11 = scmp.lt.s32.totalorder %s714_s18, %s710_s25 }
 0x127   : > { %p712_p6 = pnand %p711_p7, %p896_p13 }
 0x128   : > { %p717_p12 = por %p716_p11, %p715_p9 }
 0x129   : > { %p713_p4 = pneg %p712_p6 }
 0x12b   : > { %p718_p1 = pnand %p717_p12, %p713_p4 }
 0x12d   : > { %721 = shalt.err (!%p718_p1)
}
 0x12e   : > { %563 = dma.vmem_to_hbm [thread:$0]  (%p896_p13), %s949_s29, 128, %s947_s21, %s380_s5   ;;  %v556_v16 = vpop.f32.mrf.mxu0 }
 0x12f PF: > { %s406_s22 = sand.u32 1, %s760_s12   ;;  %p1010_p8 = scmp.ne.s32.totalorder %s1003_s23, 0 }
 0x130   : > { %p1011_p10 = scmp.ge.s32.totalorder %s780_s17, 2  ;;  %s407_s24 = scalar_lea.sflag [#allocation5], %s406_s22 }
 0x132   : > { %p574_p0 = pnand %p1011_p10, %p1010_p8 }
 0x134   : > { %p575_p2 = pneg %p574_p0 }
 0x136   : > { %755 = dma.done.wait (%p575_p2), %s407_s24, 128  }
 0x137   : > { %757 = vsyncadd (%p575_p2), %s407_s24, 4294967168  ;;  %s20_s17 = sadd.s32 1, %s780_s17   ;;  %s1012_s12 = smov %s764_s13 }
 0x138   : > { %p17_p3 = scmp.ge.s32.totalorder %s20_s17, 4   ;;  %s1013_s13 = smov %s768_s14 }
 0x139   : > { %s1014_s14 = smov %s905_s19  ;;  %s1015_s15 = smov %s776_s16 }
 0x13a   : > { %s1016_s16 = smov %s1018_s28  ;;  %19 = sbr.rel (!%p17_p3) target bundleno = 7 (0x7), region = 93 }
 0x13f   :  { %412 = vsyncpa [#allocation4], 1 }
 0x140   :  { %414 = vsyncpa [#allocation4 + $0x1], 1 }
 0x141   :  { %415 = vsyncpa [#allocation7], 1 }
 0x142   :  { %416 = vsyncpa [#allocation5], 1 }
 0x143   :  { %418 = vsyncpa [#allocation5 + $0x1], 1 }

</bundles_post_ra>
